<compile_context>
chip_gen: v7x
topology: tpu7x:2x2x1
jax: 0.10.0
libtpu: 0.0.40
codegen_flags: <defaults>
</compile_context>

<pallas_src>
import functools

import numpy as np
import jax
import jax.numpy as jnp
from jax.experimental import pallas as pl
from jax.experimental.pallas import tpu as pltpu

# tap order t = (ky+1)*3 + (kx+1); matches the host-side weight flattening below.
_TAPS = tuple((ky, kx) for ky in (-1, 0, 1) for kx in (-1, 0, 1))


def _host_shift_masks(H, W, Lp):
    """(9, Lp) float 0/1 validity masks for the 9 conv shifts on a row-major H*W plane
    (padded to Lp lanes).  Loop-invariant in H, W -> computed once on the host."""
    pos = np.arange(Lp)
    row = pos // W
    col = pos % W
    masks = np.zeros((9, Lp), np.float32)
    for t, (ky, kx) in enumerate(_TAPS):
        valid = (row + ky >= 0) & (row + ky < H) & (col + kx >= 0) & (col + kx < W)
        masks[t] = valid.astype(np.float32)
    return masks


def _inv_block_kernel(x_ref, m_ref, wF_ref, bF_ref, wG_ref, bG_ref, wH_ref, bH_ref,
                      y_ref, s_ref, *, c1, c2, W, clamp):
    Lp = x_ref.shape[-1]

    x1 = x_ref[0, :c1, :].astype(jnp.float32)   # (c1, Lp)
    x2 = x_ref[0, c1:, :].astype(jnp.float32)   # (c2, Lp)

    def stacked_taps(blk):
        """Stack the 9 masked lane-rolled planes of blk (cin, Lp) into (9*cin, Lp)."""
        planes = []
        for t, (ky, kx) in enumerate(_TAPS):
            off = ky * W + kx
            if off == 0:
                sh = blk                                   # centre tap: no shift, no mask
            else:
                sh = pltpu.roll(blk, shift=(-off) % Lp, axis=1)   # XLU lane rotate
                sh = sh * m_ref[t:t + 1, :]                       # zero invalid boundary reads
            planes.append(sh)
        return jnp.concatenate(planes, axis=0)

    def conv(stack, w_ref, b_ref):
        # One MXU matmul per conv: (cout, 9*cin) @ (9*cin, Lp) + bias broadcast.
        return jnp.dot(w_ref[...], stack, preferred_element_type=jnp.float32) + b_ref[...]

    # y1 = x1 + F(x2); store its half of y immediately (overlaps with G/H compute).
    y1 = x1 + conv(stacked_taps(x2), wF_ref, bF_ref)
    y_ref[0, :c1, :] = y1.astype(y_ref.dtype)

    # G(y1) and H(y1) share one stacked block of shifted y1 planes.
    s1 = stacked_taps(y1)
    g = conv(s1, wG_ref, bG_ref)
    h = conv(s1, wH_ref, bH_ref)

    # s = clamp * (sigmoid(h) * 2 - 1) == clamp * tanh(h / 2)   (EUP tanh)
    s = clamp * jnp.tanh(0.5 * h)
    y2 = x2 * jnp.exp(s) + g

    y_ref[0, c1:, :] = y2.astype(y_ref.dtype)
    s_ref[0] = s.astype(s_ref.dtype)


def inv_block_exp_forward(x, wF, bF, wG, bG, wH, bH, *, channel_split_num, clamp=1.0):
    B, C, H, W = x.shape
    c1 = channel_split_num
    c2 = C - c1
    L = H * W
    Lp = ((L + 127) // 128) * 128               # keep output stores full-lane (128-dense)

    x_flat = x.reshape(B, C, L)
    if Lp != L:
        x_flat = jnp.pad(x_flat, ((0, 0), (0, 0), (0, Lp - L)))

    masks = jnp.asarray(_host_shift_masks(H, W, Lp))

    # PyTorch OIHW (cout, cin, 3, 3) -> (cout, tap, cin) -> (cout, 9*cin) so that row
    # index t*cin + ci of the stacked planes matches column t*cin + ci of the weights.
    wF_mat = wF.transpose(0, 2, 3, 1).reshape(c1, 9 * c2).astype(jnp.float32)
    wG_mat = wG.transpose(0, 2, 3, 1).reshape(c2, 9 * c1).astype(jnp.float32)
    wH_mat = wH.transpose(0, 2, 3, 1).reshape(c2, 9 * c1).astype(jnp.float32)
    bFv = bF.reshape(c1, 1).astype(jnp.float32)
    bGv = bG.reshape(c2, 1).astype(jnp.float32)
    bHv = bH.reshape(c2, 1).astype(jnp.float32)

    def const_spec(shape):
        return pl.BlockSpec(shape, lambda *_: (0,) * len(shape))   # grid-invariant input

    kernel = functools.partial(_inv_block_kernel, c1=c1, c2=c2, W=W, clamp=clamp)

    y_flat, s_flat = pl.pallas_call(
        kernel,
        out_shape=(jax.ShapeDtypeStruct((B, C, Lp), x.dtype),
                   jax.ShapeDtypeStruct((B, c2, Lp), jnp.float32)),
        grid=(B,),
        in_specs=[
            pl.BlockSpec((1, C, Lp), lambda b: (b, 0, 0)),
            const_spec((9, Lp)),
            const_spec((c1, 9 * c2)), const_spec((c1, 1)),
            const_spec((c2, 9 * c1)), const_spec((c2, 1)),
            const_spec((c2, 9 * c1)), const_spec((c2, 1)),
        ],
        out_specs=(pl.BlockSpec((1, C, Lp), lambda b: (b, 0, 0)),
                   pl.BlockSpec((1, c2, Lp), lambda b: (b, 0, 0))),
        # "parallel" over batch: shards across the two TensorCores on v7x; on v5e/v6e it
        # is a short serial loop over grid-invariant-weight steps.
        compiler_params=pltpu.CompilerParams(dimension_semantics=("parallel",)),
    )(x_flat, masks, wF_mat, bFv, wG_mat, bGv, wH_mat, bHv)

    if Lp != L:
        y_flat = y_flat[..., :L]
        s_flat = s_flat[..., :L]
    y = y_flat.reshape(B, C, H, W)
    s = s_flat.reshape(B, c2, H, W)
    return y, s


# ---------------- pure-JAX reference (for correctness check) ----------------
def _conv3x3_ref(x, w, b):
    y = jax.lax.conv_general_dilated(x, w, (1, 1), ((1, 1), (1, 1)),
                                     dimension_numbers=("NCHW", "OIHW", "NCHW"))
    return y + b[None, :, None, None]


def inv_block_exp_ref(x, wF, bF, wG, bG, wH, bH, *, channel_split_num, clamp=1.0):
    c1 = channel_split_num
    x1, x2 = x[:, :c1], x[:, c1:]
    y1 = x1 + _conv3x3_ref(x2, wF, bF)
    s = clamp * (jax.nn.sigmoid(_conv3x3_ref(y1, wH, bH)) * 2.0 - 1.0)
    y2 = x2 * jnp.exp(s) + _conv3x3_ref(y1, wG, bG)
    return jnp.concatenate([y1, y2], axis=1), s


if __name__ == "__main__":
    # InvBlockExp(subnet=Conv2d(cin, cout, 3, padding=1), channel_num=4, channel_split_num=2)
    B, C, H, W = 2, 4, 16, 16
    c1 = 2                      # channel_split_num -> split_len1
    c2 = C - c1                 # split_len2
    clamp = 1.0

    key = jax.random.PRNGKey(0)
    ks = jax.random.split(key, 7)
    x = jax.random.normal(ks[0], (B, C, H, W), jnp.float32)
    # F: split_len2 -> split_len1 ; G, H: split_len1 -> split_len2 (PyTorch OIHW layout)
    wF = jax.random.normal(ks[1], (c1, c2, 3, 3), jnp.float32) * 0.2
    bF = jax.random.normal(ks[2], (c1,), jnp.float32) * 0.1
    wG = jax.random.normal(ks[3], (c2, c1, 3, 3), jnp.float32) * 0.2
    bG = jax.random.normal(ks[4], (c2,), jnp.float32) * 0.1
    wH = jax.random.normal(ks[5], (c2, c1, 3, 3), jnp.float32) * 0.2
    bH = jax.random.normal(ks[6], (c2,), jnp.float32) * 0.1

    fwd = jax.jit(functools.partial(inv_block_exp_forward,
                                    channel_split_num=c1, clamp=clamp))
    y, s = fwd(x, wF, bF, wG, bG, wH, bH)
    jax.block_until_ready((y, s))

    y_ref, s_ref = inv_block_exp_ref(x, wF, bF, wG, bG, wH, bH,
                                     channel_split_num=c1, clamp=clamp)
    assert y.shape == (B, C, H, W) and y.dtype == x.dtype
    assert s.shape == (B, c2, H, W)
    assert jnp.allclose(y, y_ref, atol=1e-4, rtol=1e-4), float(jnp.max(jnp.abs(y - y_ref)))
    assert jnp.allclose(s, s_ref, atol=1e-4, rtol=1e-4), float(jnp.max(jnp.abs(s - s_ref)))

    _jacobian = jnp.sum(s) / x.shape[0]   # matches module.jacobian(x, rev=False)
    print("KERNEL_OK")
</pallas_src>

<mosaic_0001>
module attributes {stable_mosaic.version = 11 : i64} {
  func.func @_inv_block_kernel(%arg0: i32, %arg1: memref<1x4x256xf32, #tpu.memory_space<vmem>>, %arg2: memref<9x256xf32, #tpu.memory_space<vmem>>, %arg3: memref<2x18xf32, #tpu.memory_space<vmem>>, %arg4: memref<2x1xf32, #tpu.memory_space<vmem>>, %arg5: memref<2x18xf32, #tpu.memory_space<vmem>>, %arg6: memref<2x1xf32, #tpu.memory_space<vmem>>, %arg7: memref<2x18xf32, #tpu.memory_space<vmem>>, %arg8: memref<2x1xf32, #tpu.memory_space<vmem>>, %arg9: memref<1x4x256xf32, #tpu.memory_space<vmem>>, %arg10: memref<1x2x256xf32, #tpu.memory_space<vmem>>) attributes {dimension_semantics = [#tpu.dimension_semantics<parallel>], iteration_bounds = array<i64: 2>, scalar_prefetch = 0 : i64, scratch_operands = 0 : i64, tpu.core_type = #tpu.core_type<tc>, window_params = [{transform_indices = @transform_0, window_bounds = array<i64: 1, 4, 256>}, {pipeline_mode = #tpu.pipeline_mode<synchronous>, transform_indices = @transform_1, window_bounds = array<i64: 9, 256>}, {pipeline_mode = #tpu.pipeline_mode<synchronous>, transform_indices = @transform_2, window_bounds = array<i64: 2, 18>}, {pipeline_mode = #tpu.pipeline_mode<synchronous>, transform_indices = @transform_3, window_bounds = array<i64: 2, 1>}, {pipeline_mode = #tpu.pipeline_mode<synchronous>, transform_indices = @transform_4, window_bounds = array<i64: 2, 18>}, {pipeline_mode = #tpu.pipeline_mode<synchronous>, transform_indices = @transform_5, window_bounds = array<i64: 2, 1>}, {pipeline_mode = #tpu.pipeline_mode<synchronous>, transform_indices = @transform_6, window_bounds = array<i64: 2, 18>}, {pipeline_mode = #tpu.pipeline_mode<synchronous>, transform_indices = @transform_7, window_bounds = array<i64: 2, 1>}, {transform_indices = @transform_8, window_bounds = array<i64: 1, 4, 256>}, {transform_indices = @transform_9, window_bounds = array<i64: 1, 2, 256>}]} {
    %c0 = arith.constant 0 : index
    %c0_0 = arith.constant 0 : index
    %c0_1 = arith.constant 0 : index
    %0 = vector.load %arg1[%c0, %c0_0, %c0_1] : memref<1x4x256xf32, #tpu.memory_space<vmem>>, vector<1x2x256xf32>
    %1 = vector.shape_cast %0 : vector<1x2x256xf32> to vector<2x256xf32>
    %c0_2 = arith.constant 0 : index
    %c2 = arith.constant 2 : index
    %c0_3 = arith.constant 0 : index
    %2 = vector.load %arg1[%c0_2, %c2, %c0_3] : memref<1x4x256xf32, #tpu.memory_space<vmem>>, vector<1x2x256xf32>
    %3 = vector.shape_cast %2 : vector<1x2x256xf32> to vector<2x256xf32>
    %c17_i32 = arith.constant 17 : i32
    %4 = tpu.dynamic_rotate %3 by %c17_i32 dim 1 : vector<2x256xf32>, i32 -> vector<2x256xf32>
    %c0_4 = arith.constant 0 : index
    %c0_5 = arith.constant 0 : index
    %5 = vector.load %arg2[%c0_4, %c0_5] : memref<9x256xf32, #tpu.memory_space<vmem>>, vector<1x256xf32>
    %6 = vector.broadcast %5 : vector<1x256xf32> to vector<2x256xf32>
    %7 = arith.mulf %4, %6 : vector<2x256xf32>
    %c16_i32 = arith.constant 16 : i32
    %8 = tpu.dynamic_rotate %3 by %c16_i32 dim 1 : vector<2x256xf32>, i32 -> vector<2x256xf32>
    %c1 = arith.constant 1 : index
    %c0_6 = arith.constant 0 : index
    %9 = vector.load %arg2[%c1, %c0_6] : memref<9x256xf32, #tpu.memory_space<vmem>>, vector<1x256xf32>
    %10 = vector.broadcast %9 : vector<1x256xf32> to vector<2x256xf32>
    %11 = arith.mulf %8, %10 : vector<2x256xf32>
    %c15_i32 = arith.constant 15 : i32
    %12 = tpu.dynamic_rotate %3 by %c15_i32 dim 1 : vector<2x256xf32>, i32 -> vector<2x256xf32>
    %c2_7 = arith.constant 2 : index
    %c0_8 = arith.constant 0 : index
    %13 = vector.load %arg2[%c2_7, %c0_8] : memref<9x256xf32, #tpu.memory_space<vmem>>, vector<1x256xf32>
    %14 = vector.broadcast %13 : vector<1x256xf32> to vector<2x256xf32>
    %15 = arith.mulf %12, %14 : vector<2x256xf32>
    %c1_i32 = arith.constant 1 : i32
    %16 = tpu.dynamic_rotate %3 by %c1_i32 dim 1 : vector<2x256xf32>, i32 -> vector<2x256xf32>
    %c3 = arith.constant 3 : index
    %c0_9 = arith.constant 0 : index
    %17 = vector.load %arg2[%c3, %c0_9] : memref<9x256xf32, #tpu.memory_space<vmem>>, vector<1x256xf32>
    %18 = vector.broadcast %17 : vector<1x256xf32> to vector<2x256xf32>
    %19 = arith.mulf %16, %18 : vector<2x256xf32>
    %c255_i32 = arith.constant 255 : i32
    %20 = tpu.dynamic_rotate %3 by %c255_i32 dim 1 : vector<2x256xf32>, i32 -> vector<2x256xf32>
    %c5 = arith.constant 5 : index
    %c0_10 = arith.constant 0 : index
    %21 = vector.load %arg2[%c5, %c0_10] : memref<9x256xf32, #tpu.memory_space<vmem>>, vector<1x256xf32>
    %22 = vector.broadcast %21 : vector<1x256xf32> to vector<2x256xf32>
    %23 = arith.mulf %20, %22 : vector<2x256xf32>
    %c241_i32 = arith.constant 241 : i32
    %24 = tpu.dynamic_rotate %3 by %c241_i32 dim 1 : vector<2x256xf32>, i32 -> vector<2x256xf32>
    %c6 = arith.constant 6 : index
    %c0_11 = arith.constant 0 : index
    %25 = vector.load %arg2[%c6, %c0_11] : memref<9x256xf32, #tpu.memory_space<vmem>>, vector<1x256xf32>
    %26 = vector.broadcast %25 : vector<1x256xf32> to vector<2x256xf32>
    %27 = arith.mulf %24, %26 : vector<2x256xf32>
    %c240_i32 = arith.constant 240 : i32
    %28 = tpu.dynamic_rotate %3 by %c240_i32 dim 1 : vector<2x256xf32>, i32 -> vector<2x256xf32>
    %c7 = arith.constant 7 : index
    %c0_12 = arith.constant 0 : index
    %29 = vector.load %arg2[%c7, %c0_12] : memref<9x256xf32, #tpu.memory_space<vmem>>, vector<1x256xf32>
    %30 = vector.broadcast %29 : vector<1x256xf32> to vector<2x256xf32>
    %31 = arith.mulf %28, %30 : vector<2x256xf32>
    %c239_i32 = arith.constant 239 : i32
    %32 = tpu.dynamic_rotate %3 by %c239_i32 dim 1 : vector<2x256xf32>, i32 -> vector<2x256xf32>
    %c8 = arith.constant 8 : index
    %c0_13 = arith.constant 0 : index
    %33 = vector.load %arg2[%c8, %c0_13] : memref<9x256xf32, #tpu.memory_space<vmem>>, vector<1x256xf32>
    %34 = vector.broadcast %33 : vector<1x256xf32> to vector<2x256xf32>
    %35 = arith.mulf %32, %34 : vector<2x256xf32>
    %36 = tpu.concatenate %7, %11, %15, %19, %3, %23, %27, %31, %35 in 0 : vector<2x256xf32>, vector<2x256xf32>, vector<2x256xf32>, vector<2x256xf32>, vector<2x256xf32>, vector<2x256xf32>, vector<2x256xf32>, vector<2x256xf32>, vector<2x256xf32> -> vector<18x256xf32>
    %c0_14 = arith.constant 0 : index
    %c0_15 = arith.constant 0 : index
    %37 = vector.load %arg3[%c0_14, %c0_15] : memref<2x18xf32, #tpu.memory_space<vmem>>, vector<2x18xf32>
    %cst = arith.constant dense<0.000000e+00> : vector<2x256xf32>
    %38 = tpu.matmul %37, %36, %cst {dimension_numbers = #tpu.dot_dimension_numbers<[1], [0], [0], [1], [0, 0, 1, 1], [], []>} : vector<2x18xf32>, vector<18x256xf32>, vector<2x256xf32> -> vector<2x256xf32>
    %c0_16 = arith.constant 0 : index
    %c0_17 = arith.constant 0 : index
    %39 = vector.load %arg4[%c0_16, %c0_17] : memref<2x1xf32, #tpu.memory_space<vmem>>, vector<2x1xf32>
    %40 = vector.broadcast %39 : vector<2x1xf32> to vector<2x256xf32>
    %41 = arith.addf %38, %40 : vector<2x256xf32>
    %42 = arith.addf %1, %41 : vector<2x256xf32>
    %c0_18 = arith.constant 0 : index
    %c0_19 = arith.constant 0 : index
    %c0_20 = arith.constant 0 : index
    %43 = vector.load %arg9[%c0_18, %c0_19, %c0_20] : memref<1x4x256xf32, #tpu.memory_space<vmem>>, vector<1x2x256xf32>
    %44 = vector.shape_cast %43 : vector<1x2x256xf32> to vector<2x256xf32>
    %45 = vector.shape_cast %42 : vector<2x256xf32> to vector<1x2x256xf32>
    tpu.vector_store %arg9[%c0_18, %c0_19, %c0_20], %45 {strides = array<i32>} : memref<1x4x256xf32, #tpu.memory_space<vmem>>, vector<1x2x256xf32>,
    %c17_i32_21 = arith.constant 17 : i32
    %46 = tpu.dynamic_rotate %42 by %c17_i32_21 dim 1 : vector<2x256xf32>, i32 -> vector<2x256xf32>
    %c0_22 = arith.constant 0 : index
    %c0_23 = arith.constant 0 : index
    %47 = vector.load %arg2[%c0_22, %c0_23] : memref<9x256xf32, #tpu.memory_space<vmem>>, vector<1x256xf32>
    %48 = vector.broadcast %47 : vector<1x256xf32> to vector<2x256xf32>
    %49 = arith.mulf %46, %48 : vector<2x256xf32>
    %c16_i32_24 = arith.constant 16 : i32
    %50 = tpu.dynamic_rotate %42 by %c16_i32_24 dim 1 : vector<2x256xf32>, i32 -> vector<2x256xf32>
    %c1_25 = arith.constant 1 : index
    %c0_26 = arith.constant 0 : index
    %51 = vector.load %arg2[%c1_25, %c0_26] : memref<9x256xf32, #tpu.memory_space<vmem>>, vector<1x256xf32>
    %52 = vector.broadcast %51 : vector<1x256xf32> to vector<2x256xf32>
    %53 = arith.mulf %50, %52 : vector<2x256xf32>
    %c15_i32_27 = arith.constant 15 : i32
    %54 = tpu.dynamic_rotate %42 by %c15_i32_27 dim 1 : vector<2x256xf32>, i32 -> vector<2x256xf32>
    %c2_28 = arith.constant 2 : index
    %c0_29 = arith.constant 0 : index
    %55 = vector.load %arg2[%c2_28, %c0_29] : memref<9x256xf32, #tpu.memory_space<vmem>>, vector<1x256xf32>
    %56 = vector.broadcast %55 : vector<1x256xf32> to vector<2x256xf32>
    %57 = arith.mulf %54, %56 : vector<2x256xf32>
    %c1_i32_30 = arith.constant 1 : i32
    %58 = tpu.dynamic_rotate %42 by %c1_i32_30 dim 1 : vector<2x256xf32>, i32 -> vector<2x256xf32>
    %c3_31 = arith.constant 3 : index
    %c0_32 = arith.constant 0 : index
    %59 = vector.load %arg2[%c3_31, %c0_32] : memref<9x256xf32, #tpu.memory_space<vmem>>, vector<1x256xf32>
    %60 = vector.broadcast %59 : vector<1x256xf32> to vector<2x256xf32>
    %61 = arith.mulf %58, %60 : vector<2x256xf32>
    %c255_i32_33 = arith.constant 255 : i32
    %62 = tpu.dynamic_rotate %42 by %c255_i32_33 dim 1 : vector<2x256xf32>, i32 -> vector<2x256xf32>
    %c5_34 = arith.constant 5 : index
    %c0_35 = arith.constant 0 : index
    %63 = vector.load %arg2[%c5_34, %c0_35] : memref<9x256xf32, #tpu.memory_space<vmem>>, vector<1x256xf32>
    %64 = vector.broadcast %63 : vector<1x256xf32> to vector<2x256xf32>
    %65 = arith.mulf %62, %64 : vector<2x256xf32>
    %c241_i32_36 = arith.constant 241 : i32
    %66 = tpu.dynamic_rotate %42 by %c241_i32_36 dim 1 : vector<2x256xf32>, i32 -> vector<2x256xf32>
    %c6_37 = arith.constant 6 : index
    %c0_38 = arith.constant 0 : index
    %67 = vector.load %arg2[%c6_37, %c0_38] : memref<9x256xf32, #tpu.memory_space<vmem>>, vector<1x256xf32>
    %68 = vector.broadcast %67 : vector<1x256xf32> to vector<2x256xf32>
    %69 = arith.mulf %66, %68 : vector<2x256xf32>
    %c240_i32_39 = arith.constant 240 : i32
    %70 = tpu.dynamic_rotate %42 by %c240_i32_39 dim 1 : vector<2x256xf32>, i32 -> vector<2x256xf32>
    %c7_40 = arith.constant 7 : index
    %c0_41 = arith.constant 0 : index
    %71 = vector.load %arg2[%c7_40, %c0_41] : memref<9x256xf32, #tpu.memory_space<vmem>>, vector<1x256xf32>
    %72 = vector.broadcast %71 : vector<1x256xf32> to vector<2x256xf32>
    %73 = arith.mulf %70, %72 : vector<2x256xf32>
    %c239_i32_42 = arith.constant 239 : i32
    %74 = tpu.dynamic_rotate %42 by %c239_i32_42 dim 1 : vector<2x256xf32>, i32 -> vector<2x256xf32>
    %c8_43 = arith.constant 8 : index
    %c0_44 = arith.constant 0 : index
    %75 = vector.load %arg2[%c8_43, %c0_44] : memref<9x256xf32, #tpu.memory_space<vmem>>, vector<1x256xf32>
    %76 = vector.broadcast %75 : vector<1x256xf32> to vector<2x256xf32>
    %77 = arith.mulf %74, %76 : vector<2x256xf32>
    %78 = tpu.concatenate %49, %53, %57, %61, %42, %65, %69, %73, %77 in 0 : vector<2x256xf32>, vector<2x256xf32>, vector<2x256xf32>, vector<2x256xf32>, vector<2x256xf32>, vector<2x256xf32>, vector<2x256xf32>, vector<2x256xf32>, vector<2x256xf32> -> vector<18x256xf32>
    %c0_45 = arith.constant 0 : index
    %c0_46 = arith.constant 0 : index
    %79 = vector.load %arg5[%c0_45, %c0_46] : memref<2x18xf32, #tpu.memory_space<vmem>>, vector<2x18xf32>
    %cst_47 = arith.constant dense<0.000000e+00> : vector<2x256xf32>
    %80 = tpu.matmul %79, %78, %cst_47 {dimension_numbers = #tpu.dot_dimension_numbers<[1], [0], [0], [1], [0, 0, 1, 1], [], []>} : vector<2x18xf32>, vector<18x256xf32>, vector<2x256xf32> -> vector<2x256xf32>
    %c0_48 = arith.constant 0 : index
    %c0_49 = arith.constant 0 : index
    %81 = vector.load %arg6[%c0_48, %c0_49] : memref<2x1xf32, #tpu.memory_space<vmem>>, vector<2x1xf32>
    %82 = vector.broadcast %81 : vector<2x1xf32> to vector<2x256xf32>
    %83 = arith.addf %80, %82 : vector<2x256xf32>
    %c0_50 = arith.constant 0 : index
    %c0_51 = arith.constant 0 : index
    %84 = vector.load %arg7[%c0_50, %c0_51] : memref<2x18xf32, #tpu.memory_space<vmem>>, vector<2x18xf32>
    %cst_52 = arith.constant dense<0.000000e+00> : vector<2x256xf32>
    %85 = tpu.matmul %84, %78, %cst_52 {dimension_numbers = #tpu.dot_dimension_numbers<[1], [0], [0], [1], [0, 0, 1, 1], [], []>} : vector<2x18xf32>, vector<18x256xf32>, vector<2x256xf32> -> vector<2x256xf32>
    %c0_53 = arith.constant 0 : index
    %c0_54 = arith.constant 0 : index
    %86 = vector.load %arg8[%c0_53, %c0_54] : memref<2x1xf32, #tpu.memory_space<vmem>>, vector<2x1xf32>
    %87 = vector.broadcast %86 : vector<2x1xf32> to vector<2x256xf32>
    %88 = arith.addf %85, %87 : vector<2x256xf32>
    %cst_55 = arith.constant 5.000000e-01 : f32
    %89 = vector.broadcast %cst_55 : f32 to vector<2x256xf32>
    %90 = arith.mulf %89, %88 : vector<2x256xf32>
    %91 = math.tanh %90 : vector<2x256xf32>
    %cst_56 = arith.constant 1.000000e+00 : f32
    %92 = vector.broadcast %cst_56 : f32 to vector<2x256xf32>
    %93 = arith.mulf %92, %91 : vector<2x256xf32>
    %94 = math.exp %93 : vector<2x256xf32>
    %95 = arith.mulf %3, %94 : vector<2x256xf32>
    %96 = arith.addf %95, %83 : vector<2x256xf32>
    %c0_57 = arith.constant 0 : index
    %c2_58 = arith.constant 2 : index
    %c0_59 = arith.constant 0 : index
    %97 = vector.load %arg9[%c0_57, %c2_58, %c0_59] : memref<1x4x256xf32, #tpu.memory_space<vmem>>, vector<1x2x256xf32>
    %98 = vector.shape_cast %97 : vector<1x2x256xf32> to vector<2x256xf32>
    %99 = vector.shape_cast %96 : vector<2x256xf32> to vector<1x2x256xf32>
    tpu.vector_store %arg9[%c0_57, %c2_58, %c0_59], %99 {strides = array<i32>} : memref<1x4x256xf32, #tpu.memory_space<vmem>>, vector<1x2x256xf32>,
    %c0_60 = arith.constant 0 : index
    %c0_61 = arith.constant 0 : index
    %c0_62 = arith.constant 0 : index
    %100 = vector.load %arg10[%c0_60, %c0_61, %c0_62] : memref<1x2x256xf32, #tpu.memory_space<vmem>>, vector<1x2x256xf32>
    %101 = vector.shape_cast %100 : vector<1x2x256xf32> to vector<2x256xf32>
    %102 = vector.shape_cast %93 : vector<2x256xf32> to vector<1x2x256xf32>
    tpu.vector_store %arg10[%c0_60, %c0_61, %c0_62], %102 {strides = array<i32>} : memref<1x2x256xf32, #tpu.memory_space<vmem>>, vector<1x2x256xf32>,
    return
  }
  func.func @transform_0(%arg0: i32) -> (i32, i32, i32) {
    %c0_i32 = arith.constant 0 : i32
    %c0_i32_0 = arith.constant 0 : i32
    %c0_i32_1 = arith.constant 0 : i32
    return %arg0, %c0_i32, %c0_i32_0 : i32, i32, i32
  }
  func.func @transform_1(%arg0: i32) -> (i32, i32) {
    %c0_i32 = arith.constant 0 : i32
    %c0_i32_0 = arith.constant 0 : i32
    %c0_i32_1 = arith.constant 0 : i32
    return %c0_i32, %c0_i32_0 : i32, i32
  }
  func.func @transform_2(%arg0: i32) -> (i32, i32) {
    %c0_i32 = arith.constant 0 : i32
    %c0_i32_0 = arith.constant 0 : i32
    %c0_i32_1 = arith.constant 0 : i32
    return %c0_i32, %c0_i32_0 : i32, i32
  }
  func.func @transform_3(%arg0: i32) -> (i32, i32) {
    %c0_i32 = arith.constant 0 : i32
    %c0_i32_0 = arith.constant 0 : i32
    %c0_i32_1 = arith.constant 0 : i32
    return %c0_i32, %c0_i32_0 : i32, i32
  }
  func.func @transform_4(%arg0: i32) -> (i32, i32) {
    %c0_i32 = arith.constant 0 : i32
    %c0_i32_0 = arith.constant 0 : i32
    %c0_i32_1 = arith.constant 0 : i32
    return %c0_i32, %c0_i32_0 : i32, i32
  }
  func.func @transform_5(%arg0: i32) -> (i32, i32) {
    %c0_i32 = arith.constant 0 : i32
    %c0_i32_0 = arith.constant 0 : i32
    %c0_i32_1 = arith.constant 0 : i32
    return %c0_i32, %c0_i32_0 : i32, i32
  }
  func.func @transform_6(%arg0: i32) -> (i32, i32) {
    %c0_i32 = arith.constant 0 : i32
    %c0_i32_0 = arith.constant 0 : i32
    %c0_i32_1 = arith.constant 0 : i32
    return %c0_i32, %c0_i32_0 : i32, i32
  }
  func.func @transform_7(%arg0: i32) -> (i32, i32) {
    %c0_i32 = arith.constant 0 : i32
    %c0_i32_0 = arith.constant 0 : i32
    %c0_i32_1 = arith.constant 0 : i32
    return %c0_i32, %c0_i32_0 : i32, i32
  }
  func.func @transform_8(%arg0: i32) -> (i32, i32, i32) {
    %c0_i32 = arith.constant 0 : i32
    %c0_i32_0 = arith.constant 0 : i32
    %c0_i32_1 = arith.constant 0 : i32
    return %arg0, %c0_i32, %c0_i32_0 : i32, i32, i32
  }
  func.func @transform_9(%arg0: i32) -> (i32, i32, i32) {
    %c0_i32 = arith.constant 0 : i32
    %c0_i32_0 = arith.constant 0 : i32
    %c0_i32_1 = arith.constant 0 : i32
    return %arg0, %c0_i32, %c0_i32_0 : i32, i32, i32
  }
}

</mosaic_0001>

<bundles_post_ra>
// kernel: inv_block_exp_forward.1
= control target key start
LH: loop header
LB: loop body
LE: loop exit
PB: predicated region body
PF: predicated region fallthrough
CT: control target
= control target key end

     0   :  { %s1325_s30 = smov 0   ;;  %s1662_s0 = inlined_call_operand.vmem [shape: f32[2,4,256], index: 0, kind: input, shape index: {}]   ;;  %s1663_s1 = inlined_call_operand.vmem [shape: f32[9,256], index: 1, kind: input, shape index: {}]   ;;  %s1664_s2 = inlined_call_operand.vmem [shape: f32[2,18], index: 2, kind: input, shape index: {}]   ;;  %s1665_s3 = inlined_call_operand.vmem [shape: f32[2,1], index: 3, kind: input, shape index: {}]   ;;  %s1666_s4 = inlined_call_operand.vmem [shape: f32[2,18], index: 4, kind: input, shape index: {}]   ;;  %s1667_s5 = inlined_call_operand.vmem [shape: f32[2,1], index: 5, kind: input, shape index: {}]   ;;  %s1668_s6 = inlined_call_operand.vmem [shape: f32[2,18], index: 6, kind: input, shape index: {}]   ;;  %s1669_s7 = inlined_call_operand.vmem [shape: f32[2,1], index: 7, kind: input, shape index: {}]   ;;  %s1670_s8 = inlined_call_operand.vmem [shape: f32[2,4,256], index: 8, kind: output, shape index: {0}]   ;;  %s1671_s9 = inlined_call_operand.vmem [shape: f32[2,2,256], index: 9, kind: output, shape index: {1}]  }
   0x1 LB: > { %s1176_s10 = sadd.s32 4294967295, %s1263_s30   ;;  %p1180_p0 = scmp.ge.s32.totalorder %s1263_s30, 1  ;;  %s1263_s30 = sphi %s1325_s30, %s20_s30  }
   0x2   : > { %p290_p1 = scmp.lt.s32.totalorder %s1263_s30, 3 }
   0x4   : > { %p291_p2 = pnand %p1180_p0, %p290_p1 }
   0x5   : > { %p331_p3 = scmp.lt.s32.totalorder (!%p291_p2), %s1176_s10, 1  ;;  %s1265_s15 = smov (!%p291_p2), 127   ;;  %v1272_v4 = vmov (!%p291_p2), 0.0   ;;  %v1273_v5 = vmov (!%p291_p2), 0   ;;  %v583_v6 = vld [vmem:[%s1665_s3] sm:$0x3] (!%p291_p2)  ;;  %v358_v9 = vlaneseq (!%p291_p2) }
   0x6   : > { %294 = sbr.rel (%p291_p2) target bundleno = 798 (0x31e), region = 52  ;;  %s1266_s16 = smov (!%p291_p2), 16   ;;  %663 = vmatprep.mubr.f32.mxu0 (!%p291_p2), %v1272_v4  ;;  %967 = vmatprep.mubr.f32.mxu1 (!%p291_p2), %v1272_v4  ;;  %v1190_v18 = vld [vmem:[%s1663_s1 + $0x5] ss:$8 sm:$0x3] (!%p291_p2)  ;;  %vm567_vm6 = vcmask (!%p291_p2), 1041408  }
   0x7   : > { %s1267_s17 = smov (!%p291_p2), 15   ;;  %s1268_s18 = smov (!%p291_p2), 113   ;;  %1246 = vset.pattern.permute.xlu0 (!%p291_p2), %v1273_v5  ;;  %1247 = vset.pattern.permute.xlu1 (!%p291_p2), %v1273_v5  ;;  %v366_v11 = vshrl.u32 (!%p291_p2), %v358_v9, 7  ;;  %v1390_v13 = vand.u32 (!%p291_p2), 127, %v358_v9  ;;  %vm570_vm8 = vcmask (!%p291_p2), 1043456   ;;  %vm573_vm9 = vcmask (!%p291_p2), 1045504  }
   0x8   : > { %s1269_s19 = smov (!%p291_p2), 17   ;;  %s1270_s20 = smov (!%p291_p2), 1   ;;  %v1402_v19 = vld [vmem:[%s1663_s1 + $0x2] ss:$8 sm:$0x3] (!%p291_p2)  ;;  %vm589_vm11 = vcmask (!%p291_p2), 146432  }
   0x9   : > { %s1271_s21 = smov (!%p291_p2), 112   ;;  %s1274_s22 = smov (!%p291_p2), 111   ;;  %v1392_v14 = vsub.s32 (!%p291_p2), 0, %v366_v11  ;;  %v1394_v15 = vsub.s32 (!%p291_p2), 1, %v366_v11  ;;  %vm447_vm0 = vcmp.lt.s32.totalorder (!%p291_p2), %v1390_v13, 127  ;;  %vm403_vm1 = vcmp.lt.s32.totalorder (!%p291_p2), %v1390_v13, 15 }
   0xa   : > { %v1187_v20 = vld [vmem:[%s1663_s1 + $0x1] ss:$8 sm:$0x3] (!%p291_p2)  ;;  %v1191_v21 = vld [vmem:[%s1663_s1 + $0x6] ss:$8 sm:$0x3] (!%p291_p2) }
   0xb   : > { %v363_v22 = vld [vmem:[%s1663_s1] ss:$8 sm:$0x3] (!%p291_p2)  ;;  %v456_v23 = vrot.slane (!%p291_p2), %v1190_v18, %v1392_v14  ;;  %v460_v24 = vrot.slane (!%p291_p2), %v1190_v18, %v1394_v15  ;;  %v412_v25 = vrot.slane (!%p291_p2), %v1402_v19, %v1392_v14  ;;  %vm381_vm2 = vcmp.lt.s32.totalorder (!%p291_p2), %v1390_v13, 16 }
   0xc   : > { %v1189_v28 = vld [vmem:[%s1663_s1 + $0x3] ss:$8 sm:$0x3] (!%p291_p2)  ;;  %v416_v29 = vrot.slane (!%p291_p2), %v1402_v19, %v1394_v15  ;;  %v390_v30 = vrot.slane (!%p291_p2), %v1187_v20, %v1392_v14  ;;  %v394_v31 = vrot.slane (!%p291_p2), %v1187_v20, %v1394_v15  ;;  %vm469_vm3 = vcmp.lt.s32.totalorder (!%p291_p2), %v1390_v13, 113 }
   0xd   : > { %s1673_s10 = smov (!%p331_p3, %s1176_s10), 1  ;;  %v478_v32 = vrot.slane %v1191_v21, %v1392_v14  ;;  %v482_v33 = vrot.slane %v1191_v21, %v1394_v15  ;;  %vm360_vm4 = vcmp.lt.s32.totalorder %v1390_v13, 17  ;;  %v368_v34 = vrot.slane %v363_v22, %v1392_v14  ;;  %v1192_v35 = vld [vmem:[%s1663_s1 + $0x7] ss:$8 sm:$0x3] }
   0xe   : > { %s1213_s11 = sshll.u32 %s1673_s10, 3  ;;  %v372_v37 = vrot.slane %v363_v22, %v1394_v15  ;;  %vm425_vm5 = vcmp.lt.s32.totalorder %v1390_v13, 1  ;;  %v434_v38 = vrot.slane %v1189_v28, %v1392_v14  ;;  %v438_v44 = vrot.slane %v1189_v28, %v1394_v15  ;;  %v1193_v5 = vld [vmem:[%s1663_s1 + $0x10] ss:$8 sm:$0x3] }
   0xf   : > { %s1341_s14 = scalar_lea.vmem %s1662_s0, %s1213_s11  ;;  %vm491_vm7 = vcmp.lt.s32.totalorder %v1390_v13, 112  ;;  %v500_v47 = vrot.slane %v1192_v35, %v1392_v14  ;;  %v504_v51 = vrot.slane %v1192_v35, %v1394_v15  ;;  %vm513_vm10 = vcmp.lt.s32.totalorder %v1390_v13, 111  ;;  %s1507_s27 = scalar_lea.vmem %s1670_s8, %s1213_s11 }
  0x10   : > { %v1344_v0 = vld [vmem:[%s1341_s14] sm:$0xcc]  ;;  %v522_v21 = vrot.slane %v1193_v5, %v1392_v14 }
  0x11   : > { %v1347_v1 = vrot.slane %v1344_v0, 2  ;;  %v349_v2 = vcombine.high %v1344_v0, %v1344_v0 }
  0x13   : > { %443 = vrot.lane.b32.xlu1 %v1347_v1, %s1265_s15  ;;  %377 = vrot.lane.b32.xlu0 %v1347_v1, %s1266_s16  ;;  %v1355_v3 = vrot.slane %v349_v2, 2 }
  0x17   : > { %399 = vrot.lane.b32.xlu0 %v1347_v1, %s1267_s17  ;;  %445 = vrot.lane.b32.xlu1 %v1355_v3, %s1265_s15 }
  0x1b   : > { %401 = vrot.lane.b32.xlu1 %v1355_v3, %s1267_s17  ;;  %379 = vrot.lane.b32.xlu0 %v1355_v3, %s1266_s16 }
  0x1f   : > { %467 = vrot.lane.b32.xlu1 %v1355_v3, %s1268_s18  ;;  %465 = vrot.lane.b32.xlu0 %v1347_v1, %s1268_s18 }
  0x23   : > { %356 = vrot.lane.b32.xlu1 %v1355_v3, %s1269_s19  ;;  %354 = vrot.lane.b32.xlu0 %v1347_v1, %s1269_s19 }
  0x27   : > { %423 = vrot.lane.b32.xlu1 %v1355_v3, %s1270_s20  ;;  %421 = vrot.lane.b32.xlu0 %v1347_v1, %s1270_s20 }
  0x2b   : > { %489 = vrot.lane.b32.xlu1 %v1355_v3, %s1271_s21  ;;  %487 = vrot.lane.b32.xlu0 %v1347_v1, %s1271_s21 }
  0x2f   : > { %511 = vrot.lane.b32.xlu1 %v1355_v3, %s1274_s22  ;;  %509 = vrot.lane.b32.xlu0 %v1347_v1, %s1274_s22 }
  0x33   : > { %586 = vperm.xlu0 %1246, %v583_v6  }
  0x85   : > { %v444_v7 = vpop.permute.xlu1 %443  ;;  %v378_v8 = vpop.permute.xlu0 %377 }
  0x89   : > { %v400_v10 = vpop.permute.xlu0 %399  ;;  %v446_v12 = vpop.permute.xlu1 %445 }
  0x8a   : > { %v449_v36 = vsel %vm447_vm0, %v446_v12, %v444_v7  ;;  %v448_v39 = vsel %vm447_vm0, %v444_v7, %v446_v12 }
  0x8b   : > { %v464_v48 = vmul.f32 %v460_v24, %v449_v36  ;;  %v463_v52 = vmul.f32 %v456_v23, %v448_v39 }
  0x8d   : > { %v402_v16 = vpop.permute.xlu1 %401  ;;  %v380_v17 = vpop.permute.xlu0 %379  ;;  %v552_v6 = vrot.slane %v464_v48, 6 }
  0x8e   : > { %v382_v40 = vsel %vm381_vm2, %v378_v8, %v380_v17  ;;  %v383_v41 = vsel %vm381_vm2, %v380_v17, %v378_v8  ;;  %v404_v55 = vsel %vm403_vm1, %v400_v10, %v402_v16  ;;  %v405_v56 = vsel %vm403_vm1, %v402_v16, %v400_v10 }
  0x8f   : > { %v397_v53 = vmul.f32 %v390_v30, %v383_v41  ;;  %v398_v54 = vmul.f32 %v394_v31, %v382_v40  ;;  %v419_v9 = vmul.f32 %v412_v25, %v405_v56  ;;  %v420_v10 = vmul.f32 %v416_v29, %v404_v55 }
  0x90   : > { %v551_v16 = vrot.slane %v463_v52, 6 }
  0x91   : > { %v468_v26 = vpop.permute.xlu1 %467  ;;  %v466_v27 = vpop.permute.xlu0 %465  ;;  %v533_v11 = vrot.slane %v397_v53, 6  ;;  %v534_v12 = vrot.slane %v398_v54, 6  ;;  %v539_v30 = vrot.slane %v419_v9, 4  ;;  %v540_v31 = vrot.slane %v420_v10, 4 }
  0x92   : > { %v470_v45 = vsel %vm469_vm3, %v466_v27, %v468_v26  ;;  %v471_v46 = vsel %vm469_vm3, %v468_v26, %v466_v27  ;;  %v576_v39 = vsel %vm567_vm6, %v1347_v1, %v551_v16  ;;  %v1197_v9 = vld [vmem:[%s1663_s1 + $0x1] ss:$8 sm:$0x3]  ;;  %v1200_v10 = vld [vmem:[%s1663_s1 + $0x5] ss:$8 sm:$0x3] }
  0x93   : > { %v485_v57 = vmul.f32 %v478_v32, %v470_v45  ;;  %v486_v58 = vmul.f32 %v482_v33, %v471_v46  ;;  %v577_v32 = vsel %vm567_vm6, %v1355_v3, %v552_v6  ;;  %v526_v33 = vrot.slane %v1193_v5, %v1394_v15  ;;  %v1201_v16 = vld [vmem:[%s1663_s1 + $0x6] ss:$8 sm:$0x3] }
  0x95   : > { %v357_v42 = vpop.permute.xlu1 %356  ;;  %v355_v43 = vpop.permute.xlu0 %354  ;;  %v557_v17 = vrot.slane %v485_v57, 4  ;;  %v558_v18 = vrot.slane %v486_v58, 4  ;;  %v346_v57 = vld [vmem:[%s1341_s14] sm:$0x33] }
  0x96   : > { %v361_v49 = vsel %vm360_vm4, %v355_v43, %v357_v42  ;;  %v362_v50 = vsel %vm360_vm4, %v357_v42, %v355_v43 }
  0x97   : > { %v375_v61 = vmul.f32 %v368_v34, %v362_v50  ;;  %v376_v62 = vmul.f32 %v372_v37, %v361_v49  ;;  %v579_v37 = vsel %vm570_vm8, %v577_v32, %v558_v18  ;;  %v578_v3 = vsel %vm570_vm8, %v576_v39, %v557_v17 }
  0x98   : > { %v710_v18 = vrot.slane %v1197_v9, %v1392_v14 }
  0x99   : > { %v424_v59 = vpop.permute.xlu1 %423  ;;  %v422_v60 = vpop.permute.xlu0 %421  ;;  %v569_v24 = vsel %vm567_vm6, %v376_v62, %v534_v12  ;;  %v568_v25 = vsel %vm567_vm6, %v375_v61, %v533_v11  ;;  %v888_v61 = vld [vmem:[%s1667_s5] sm:$0x3]  ;;  %v1198_v12 = vld [vmem:[%s1663_s1 + $0x2] ss:$8 sm:$0x3] }
  0x9a   : > { %v426_v63 = vsel %vm425_vm5, %v422_v60, %v424_v59  ;;  %v427_v2 = vsel %vm425_vm5, %v424_v59, %v422_v60  ;;  %v572_v40 = vsel %vm570_vm8, %v569_v24, %v540_v31  ;;  %v571_v42 = vsel %vm570_vm8, %v568_v25, %v539_v30  ;;  %v975_v60 = vld [vmem:[%s1669_s7] sm:$0x3] }
  0x9b   : > { %v441_v7 = vmul.f32 %v434_v38, %v427_v2  ;;  %v442_v8 = vmul.f32 %v438_v44, %v426_v63  ;;  %v734_v25 = vrot.slane %v1198_v12, %v1394_v15 }
  0x9d   : > { %v490_v19 = vpop.permute.xlu1 %489  ;;  %v488_v20 = vpop.permute.xlu0 %487  ;;  %v545_v26 = vrot.slane %v441_v7, 2  ;;  %v546_v27 = vrot.slane %v442_v8, 2 }
  0x9e   : > { %v492_v22 = vsel %vm491_vm7, %v488_v20, %v490_v19  ;;  %v493_v23 = vsel %vm491_vm7, %v490_v19, %v488_v20  ;;  %v685_v19 = vld [vmem:[%s1663_s1] ss:$8 sm:$0x3]  ;;  %v714_v20 = vrot.slane %v1197_v9, %v1394_v15 }
  0x9f   : > { %v507_v28 = vmul.f32 %v500_v47, %v492_v22  ;;  %v508_v29 = vmul.f32 %v504_v51, %v493_v23  ;;  %v575_v43 = vsel %vm573_vm9, %v572_v40, %v546_v27  ;;  %v574_v45 = vsel %vm573_vm9, %v571_v42, %v545_v26  ;;  %v582_v51 = vld [vmem:[%s1664_s2] sm:$0x3] }
  0xa0   : > { %v774_v22 = vrot.slane %v1200_v10, %v1394_v15  ;;  %v730_v23 = vrot.slane %v1198_v12, %v1392_v14  ;;  %v790_v26 = vrot.slane %v1201_v16, %v1392_v14  ;;  %v794_v27 = vrot.slane %v1201_v16, %v1394_v15 }
  0xa1   : > { %v563_v34 = vrot.slane %v507_v28, 2  ;;  %v564_v35 = vrot.slane %v508_v29, 2  ;;  %v512_v36 = vpop.permute.xlu1 %511  ;;  %v510_v38 = vpop.permute.xlu0 %509  ;;  %v1199_v28 = vld [vmem:[%s1663_s1 + $0x3] ss:$8 sm:$0x3]  ;;  %v690_v32 = vrot.slane %v685_v19, %v1392_v14 }
  0xa2   : > { %v515_v41 = vsel %vm513_vm10, %v512_v36, %v510_v38  ;;  %v514_v1 = vsel %vm513_vm10, %v510_v38, %v512_v36  ;;  %v694_v38 = vrot.slane %v685_v19, %v1394_v15  ;;  %v754_v42 = vrot.slane %v1199_v28, %v1394_v15 }
  0xa3   : > { %v581_v44 = vsel %vm573_vm9, %v579_v37, %v564_v35  ;;  %v580_v46 = vsel %vm573_vm9, %v578_v3, %v563_v34  ;;  %v530_v48 = vmul.f32 %v526_v33, %v515_v41  ;;  %v529_v50 = vmul.f32 %v522_v21, %v514_v1  ;;  %v1202_v3 = vld [vmem:[%s1663_s1 + $0x7] ss:$8 sm:$0x3] }
  0xa4   : > { %v1216_v47 = vpack.c.bf16 %v581_v44, %v575_v43  ;;  %v1218_v49 = vpack.c.bf16 %v580_v46, %v574_v45  ;;  %v770_v21 = vrot.slane %v1200_v10, %v1392_v14  ;;  %v750_v41 = vrot.slane %v1199_v28, %v1392_v14 }
  0xa6   : > { %1217 = vmatprep.subr.bf16.mxu0 %v1216_v47 }
  0xa7   : > { %1219 = vmatpush1.bf16.msra.mxu0 %v1218_v49 }
  0xa8   : > { %1194 = vmatprep.subr.msk.mxu0 %vm567_vm6, %v530_v48 }
  0xab   : > { %1195 = vmatpush1.msk.msra.mxu0 %vm567_vm6, %v529_v50 }
  0xac   : > { %1196 = vmatmul.mubr.msk.f32.vlgmr.msra.gmra.mrb[0].mxu0 %vm589_vm11, %v582_v51 }
  0xad   : > { %1048 = vmatprep.mubr.f32.mxu0 %v1272_v4 }
  0xb2   : > { %v587_v52 = vpop.permute.xlu0 %586 }
 0x17f   : > { %v665_v53 = vpop.f32.mrb[0].mxu0 }
 0x180   : > { %v666_v54 = vadd.f32 %v665_v53, %v587_v52  ;;  %v667_v55 = vpop.f32.mrb[1].mxu0 }
 0x181   : > { %v668_v56 = vadd.f32 %v667_v55, %v587_v52 }
 0x183   : > { %v672_v58 = vcombine.low %v666_v54, %v668_v56  ;;  %v810_v54 = vrot.slane %v1202_v3, %v1392_v14 }
 0x185   : > { %v1509_v59 = vadd.f32 %v672_v58, %v346_v57  ;;  %v814_v58 = vrot.slane %v1202_v3, %v1394_v15 }
 0x187   : > { %759 = vrot.lane.b32.xlu0 %v1509_v59, %s1265_s15  ;;  %699 = vrot.lane.b32.xlu1 %v1509_v59, %s1266_s16  ;;  %675 = vst [vmem:[%s1507_s27] sm:$0x33] %v1509_v59  ;;  %v1519_v4 = vcombine.high %v1509_v59, %v1509_v59 }
 0x18b   : > { %719 = vrot.lane.b32.xlu0 %v1509_v59, %s1267_s17  ;;  %701 = vrot.lane.b32.xlu1 %v1519_v4, %s1266_s16 }
 0x18f   : > { %779 = vrot.lane.b32.xlu0 %v1509_v59, %s1268_s18  ;;  %761 = vrot.lane.b32.xlu1 %v1519_v4, %s1265_s15 }
 0x193   : > { %679 = vrot.lane.b32.xlu0 %v1509_v59, %s1269_s19  ;;  %721 = vrot.lane.b32.xlu1 %v1519_v4, %s1267_s17 }
 0x197   : > { %739 = vrot.lane.b32.xlu0 %v1509_v59, %s1270_s20  ;;  %781 = vrot.lane.b32.xlu1 %v1519_v4, %s1268_s18 }
 0x19b   : > { %799 = vrot.lane.b32.xlu0 %v1509_v59, %s1271_s21  ;;  %681 = vrot.lane.b32.xlu1 %v1519_v4, %s1269_s19  ;;  %s1215_s19 = sshll.u32 %s1673_s10, 2 }
 0x19f   : > { %819 = vrot.lane.b32.xlu0 %v1509_v59, %s1274_s22  ;;  %741 = vrot.lane.b32.xlu1 %v1519_v4, %s1270_s20 }
 0x1a3   : > { %978 = vperm.xlu0 %1246, %v975_v60   ;;  %801 = vrot.lane.b32.xlu1 %v1519_v4, %s1271_s21 }
 0x1a7   : > { %821 = vrot.lane.b32.xlu1 %v1519_v4, %s1274_s22  ;;  %s345_s22 = scalar_lea.vmem %s1671_s9, %s1215_s19 }
 0x1ab   : > { %891 = vperm.xlu1 %1247, %v888_v61  }
 0x1f9   : > { %v760_v62 = vpop.permute.xlu0 %759  ;;  %v700_v63 = vpop.permute.xlu1 %699 }
 0x1fd   : > { %v720_v2 = vpop.permute.xlu0 %719  ;;  %v702_v5 = vpop.permute.xlu1 %701 }
 0x1fe   : > { %v704_v24 = vsel %vm381_vm2, %v702_v5, %v700_v63  ;;  %v703_v29 = vsel %vm381_vm2, %v700_v63, %v702_v5  ;;  %v1203_v5 = vld [vmem:[%s1663_s1 + $0x10] ss:$8 sm:$0x3] }
 0x1ff   : > { %v717_v39 = vmul.f32 %v710_v18, %v704_v24  ;;  %v718_v43 = vmul.f32 %v714_v20, %v703_v29 }
 0x201   : > { %v762_v6 = vpop.permute.xlu1 %761  ;;  %v780_v7 = vpop.permute.xlu0 %779  ;;  %v841_v60 = vrot.slane %v717_v39, 6  ;;  %v842_v61 = vrot.slane %v718_v43, 6 }
 0x202   : > { %v763_v30 = vsel %vm447_vm0, %v760_v62, %v762_v6  ;;  %v764_v31 = vsel %vm447_vm0, %v762_v6, %v760_v62 }
 0x203   : > { %v777_v44 = vmul.f32 %v770_v21, %v763_v30  ;;  %v778_v45 = vmul.f32 %v774_v22, %v764_v31 }
 0x205   : > { %v722_v8 = vpop.permute.xlu1 %721  ;;  %v680_v11 = vpop.permute.xlu0 %679  ;;  %v860_v62 = vrot.slane %v778_v45, 6  ;;  %v859_v6 = vrot.slane %v777_v44, 6 }
 0x206   : > { %v723_v34 = vsel %vm403_vm1, %v720_v2, %v722_v8  ;;  %v724_v47 = vsel %vm403_vm1, %v722_v8, %v720_v2 }
 0x207   : > { %v738_v1 = vmul.f32 %v734_v25, %v723_v34  ;;  %v737_v63 = vmul.f32 %v730_v23, %v724_v47  ;;  %v834_v23 = vrot.slane %v1203_v5, %v1394_v15  ;;  %v882_v24 = vsel %vm567_vm6, %v1519_v4, %v860_v62 }
 0x208   : > { %v881_v29 = vsel %vm567_vm6, %v1509_v59, %v859_v6 }
 0x209   : > { %v782_v17 = vpop.permute.xlu1 %781  ;;  %v740_v35 = vpop.permute.xlu0 %739  ;;  %v847_v22 = vrot.slane %v737_v63, 4 }
 0x20a   : > { %v783_v36 = vsel %vm469_vm3, %v780_v7, %v782_v17  ;;  %v784_v37 = vsel %vm469_vm3, %v782_v17, %v780_v7  ;;  %v848_v7 = vrot.slane %v738_v1, 4 }
 0x20b   : > { %v797_v48 = vmul.f32 %v790_v26, %v783_v36  ;;  %v798_v49 = vmul.f32 %v794_v27, %v784_v37 }
 0x20d   : > { %v682_v33 = vpop.permute.xlu1 %681  ;;  %v800_v2 = vpop.permute.xlu0 %799  ;;  %v865_v8 = vrot.slane %v797_v48, 4  ;;  %v866_v9 = vrot.slane %v798_v49, 4 }
 0x20e   : > { %v683_v40 = vsel %vm360_vm4, %v680_v11, %v682_v33  ;;  %v684_v46 = vsel %vm360_vm4, %v682_v33, %v680_v11 }
 0x20f   : > { %v698_v51 = vmul.f32 %v694_v38, %v683_v40  ;;  %v697_v55 = vmul.f32 %v690_v32, %v684_v46  ;;  %v884_v32 = vsel %vm570_vm8, %v882_v24, %v866_v9  ;;  %v883_v15 = vsel %vm570_vm8, %v881_v29, %v865_v8 }
 0x210   : > { %v830_v38 = vrot.slane %v1203_v5, %v1392_v14  ;;  %v887_v14 = vld [vmem:[%s1666_s4] sm:$0x3] }
 0x211   : > { %v742_v50 = vpop.permute.xlu1 %741  ;;  %v876_v17 = vsel %vm567_vm6, %v698_v51, %v842_v61  ;;  %v875_v21 = vsel %vm567_vm6, %v697_v55, %v841_v60  ;;  %v820_v30 = vpop.permute.xlu0 %819 }
 0x212   : > { %v743_v52 = vsel %vm425_vm5, %v740_v35, %v742_v50  ;;  %v744_v53 = vsel %vm425_vm5, %v742_v50, %v740_v35  ;;  %v878_v28 = vsel %vm570_vm8, %v876_v17, %v848_v7  ;;  %v877_v33 = vsel %vm570_vm8, %v875_v21, %v847_v22 }
 0x213   : > { %v757_v56 = vmul.f32 %v750_v41, %v744_v53  ;;  %v758_v57 = vmul.f32 %v754_v42, %v743_v52  ;;  %v974_v42 = vld [vmem:[%s1668_s6] sm:$0x3] }
 0x215   : > { %v802_v10 = vpop.permute.xlu1 %801  ;;  %v854_v11 = vrot.slane %v758_v57, 2  ;;  %v853_v18 = vrot.slane %v757_v56, 2 }
 0x216   : > { %v803_v12 = vsel %vm491_vm7, %v800_v2, %v802_v10  ;;  %v804_v16 = vsel %vm491_vm7, %v802_v10, %v800_v2 }
 0x217   : > { %v817_v19 = vmul.f32 %v810_v54, %v803_v12  ;;  %v818_v20 = vmul.f32 %v814_v58, %v804_v16  ;;  %v880_v31 = vsel %vm573_vm9, %v878_v28, %v854_v11  ;;  %v879_v35 = vsel %vm573_vm9, %v877_v33, %v853_v18 }
 0x219   : > { %v871_v25 = vrot.slane %v817_v19, 2  ;;  %v872_v26 = vrot.slane %v818_v20, 2  ;;  %v822_v27 = vpop.permute.xlu1 %821 }
 0x21a   : > { %v824_v4 = vsel %vm513_vm10, %v822_v27, %v820_v30  ;;  %v823_v39 = vsel %vm513_vm10, %v820_v30, %v822_v27 }
 0x21b   : > { %v886_v34 = vsel %vm573_vm9, %v884_v32, %v872_v26  ;;  %v885_v36 = vsel %vm573_vm9, %v883_v15, %v871_v25  ;;  %v838_v40 = vmul.f32 %v834_v23, %v824_v4  ;;  %v837_v41 = vmul.f32 %v830_v38, %v823_v39 }
 0x21c   : > { %v1220_v37 = vpack.c.bf16 %v886_v34, %v880_v31  ;;  %v1222_v59 = vpack.c.bf16 %v885_v36, %v879_v35 }
 0x21e   : > { %1221 = vmatprep.subr.bf16.mxu1 %v1220_v37  ;;  %1225 = vmatprep.subr.bf16.mxu0 %v1220_v37 }
 0x21f   : > { %1223 = vmatpush1.bf16.msra.mxu1 %v1222_v59  ;;  %1227 = vmatpush1.bf16.msra.mxu0 %v1222_v59 }
 0x220   : > { %1204 = vmatprep.subr.msk.mxu1 %vm567_vm6, %v838_v40  ;;  %1207 = vmatprep.subr.msk.mxu0 %vm567_vm6, %v838_v40 }
 0x222   : > { %v979_v3 = vpop.permute.xlu0 %978 }
 0x223   : > { %1205 = vmatpush1.msk.msra.mxu1 %vm567_vm6, %v837_v41  ;;  %1208 = vmatpush1.msk.msra.mxu0 %vm567_vm6, %v837_v41 }
 0x224   : > { %1209 = vmatmul.mubr.msk.f32.vlgmr.msra.gmra.mrb[2].mxu0 %vm589_vm11, %v974_v42  ;;  %1206 = vmatmul.mubr.msk.f32.vlgmr.msra.gmra.mrb[0].mxu1 %vm589_vm11, %v887_v14 }
 0x22a   : > { %v892_v13 = vpop.permute.xlu1 %891 }
 0x2f7   : > { %v1050_v43 = vpop.f32.mrb[2].mxu0  ;;  %v969_v44 = vpop.f32.mrb[0].mxu1 }
 0x2f8   : > { %v1051_v45 = vadd.f32 %v1050_v43, %v979_v3  ;;  %v1052_v46 = vpop.f32.mrb[3].mxu0  ;;  %v971_v47 = vpop.f32.mrb[1].mxu1  ;;  %v970_v1 = vadd.f32 %v969_v44, %v892_v13 }
 0x2f9   : > { %v1053_v48 = vadd.f32 %v1052_v46, %v979_v3  ;;  %v972_v49 = vadd.f32 %v971_v47, %v892_v13 }
 0x2fa   : > { %v1055_v50 = vmul.f32 0.5, %v1051_v45 }
 0x2fb   : > { %v1056_v51 = vmul.f32 0.5, %v1053_v48  ;;  %v1071_v52 = vcombine.low %v970_v1, %v972_v49 }
 0x2fc   : > { %1249 = vtanh.f32 %v1055_v50 }
 0x2fd   : > { %1251 = vtanh.f32 %v1056_v51  ;;  %v1072_v63 = vrot.slane %v1071_v52, 6 }
 0x306   : > { %v1250_v53 = vpop.eup %1249 }
 0x307   : > { %v1252_v54 = vpop.eup %1251  ;;  %v1059_v55 = vmul.f32 1.442695, %v1250_v53 }
 0x308   : > { %v1061_v56 = vmul.f32 1.442695, %v1252_v54  ;;  %v1078_v57 = vcombine.low %v1250_v53, %v1252_v54 }
 0x309   : > { %1253 = vpow2.f32 %v1059_v55 }
 0x30a   : > { %1255 = vpow2.f32 %v1061_v56  ;;  %1210 = vst.sshfl [vmem:[%s345_s22] sm:$0x33 pattern:$0x76325410] %v1078_v57 }
 0x313   : > { %v1254_v58 = vpop.eup %1253 }
 0x314   : > { %v1256_v60 = vpop.eup %1255 }
 0x315   : > { %v1065_v61 = vcombine.low %v1254_v58, %v1256_v60 }
 0x317   : > { %v1066_v62 = vrot.slane %v1065_v61, 6 }
 0x319   : > { %v1068_v2 = vmul.f32 %v1066_v62, %v1344_v0 }
 0x31b   : > { %v1074_v5 = vadd.f32 %v1072_v63, %v1068_v2 }
 0x31d   : > { %1075 = vst [vmem:[%s1507_s27] sm:$0xcc] %v1074_v5 }
 0x31e PF: > { %s20_s30 = sadd.s32 1, %s1263_s30  }
 0x31f   : > { %p17_p4 = scmp.ge.s32.totalorder %s20_s30, 4  }
 0x321   :  { %19 = sbr.rel (!%p17_p4) target bundleno = 1 (0x1), region = 101 }

</bundles_post_ra>
